<compile_context>
chip_gen: v6e
topology: v6e:2x2x1
jax: 0.10.0
libtpu: 0.0.40
codegen_flags: <defaults>
</compile_context>

<pallas_src>
import functools

import jax
import jax.numpy as jnp
from jax.experimental import pallas as pl
from jax.experimental.pallas import tpu as pltpu

BN_EPS = 1e-5
LEAKY_SLOPE = 0.01  # nn.LeakyReLU() default negative_slope


def _round_up(v, m):
    return (v + m - 1) // m * m


def _hidden_kernel(apply_bn, n_valid, tm, *refs):
    """[optional BN+LeakyReLU of the input] -> Linear -> (z, partial BN stats).

    Layout: activations are (features, TM) -- batch on lanes.
    refs = ([mean, rstd,] h_in, W, b, z_out, psum_out, psumsq_out)
    """
    if apply_bn:
        mean_ref, rstd_ref, h_ref, w_ref, b_ref, z_ref, psum_ref, psumsq_ref = refs
    else:
        h_ref, w_ref, b_ref, z_ref, psum_ref, psumsq_ref = refs

    h = h_ref[...]                                       # (c_in, tm) f32
    if apply_bn:
        h = (h - mean_ref[...]) * rstd_ref[...]          # BN (gamma=1, beta=0)
        h = jnp.where(h >= 0.0, h, LEAKY_SLOPE * h)      # LeakyReLU

    # Linear: (h_out, c_in) @ (c_in, tm) -> (h_out, tm); bias rides the epilogue.
    z = jnp.dot(w_ref[...], h, preferred_element_type=jnp.float32) + b_ref[...]
    z_ref[...] = z                                       # lane-dense store

    # Masked per-tile partial BatchNorm statistics (padded batch lanes excluded).
    t = pl.program_id(0)
    lane = jax.lax.broadcasted_iota(jnp.int32, (1, tm), 1) + t * tm
    valid = (lane < n_valid).astype(jnp.float32)         # (1, tm)
    zv = z * valid
    psum_ref[...] = jnp.sum(zv, axis=1, keepdims=True)[None]        # (1, h_out, 1)
    psumsq_ref[...] = jnp.sum(zv * z, axis=1, keepdims=True)[None]  # (1, h_out, 1)


def _final_kernel(mean_ref, rstd_ref, h_ref, wf_ref, bf_ref, out_ref):
    """BN+LeakyReLU -> Linear(hidden, 1) as VPU mul + sublane reduce -> sigmoid."""
    h = (h_ref[...] - mean_ref[...]) * rstd_ref[...]
    h = jnp.where(h >= 0.0, h, LEAKY_SLOPE * h)          # (hidden, tm)
    logits = jnp.sum(h * wf_ref[...], axis=0, keepdims=True) + bf_ref[...]  # (1, tm)
    eta = jax.nn.sigmoid(logits)
    out_ref[...] = (eta - 0.5) * 30.0                    # lane-dense (1, tm)


def _hidden_layer(h, w, b, mean, rstd, *, apply_bn, n_valid, tm):
    c_in, n_pad = h.shape
    h_out = w.shape[0]
    num_tiles = n_pad // tm

    inputs, in_specs = [], []
    if apply_bn:
        inputs += [mean, rstd]
        in_specs += [pl.BlockSpec((c_in, 1), lambda t: (0, 0)),
                     pl.BlockSpec((c_in, 1), lambda t: (0, 0))]
    inputs += [h, w, b]
    in_specs += [pl.BlockSpec((c_in, tm), lambda t: (0, t)),
                 pl.BlockSpec((h_out, c_in), lambda t: (0, 0)),
                 pl.BlockSpec((h_out, 1), lambda t: (0, 0))]

    out_shape = (jax.ShapeDtypeStruct((h_out, n_pad), jnp.float32),
                 jax.ShapeDtypeStruct((num_tiles, h_out, 1), jnp.float32),
                 jax.ShapeDtypeStruct((num_tiles, h_out, 1), jnp.float32))
    out_specs = (pl.BlockSpec((h_out, tm), lambda t: (0, t)),
                 pl.BlockSpec((1, h_out, 1), lambda t: (t, 0, 0)),
                 pl.BlockSpec((1, h_out, 1), lambda t: (t, 0, 0)))

    flops = 2 * n_pad * c_in * h_out + 10 * n_pad * h_out
    bytes_accessed = 4 * (c_in * n_pad + h_out * c_in + h_out + h_out * n_pad
                          + 2 * num_tiles * h_out + (2 * c_in if apply_bn else 0))

    z, psum, psumsq = pl.pallas_call(
        functools.partial(_hidden_kernel, apply_bn, n_valid, tm),
        grid=(num_tiles,),
        in_specs=in_specs,
        out_specs=out_specs,
        out_shape=out_shape,
        compiler_params=pltpu.CompilerParams(dimension_semantics=("parallel",)),
        cost_estimate=pl.CostEstimate(flops=flops, transcendentals=0,
                                      bytes_accessed=bytes_accessed),
    )(*inputs)

    # Tiny finalization of the exact full-batch BN statistics (biased variance).
    s = jnp.sum(psum, axis=0)                  # (h_out, 1)
    ss = jnp.sum(psumsq, axis=0)               # (h_out, 1)
    new_mean = s / n_valid
    var = jnp.maximum(ss / n_valid - new_mean * new_mean, 0.0)
    new_rstd = jax.lax.rsqrt(var + BN_EPS)
    return z, new_mean, new_rstd


def _final_layer(h, wf, bf, mean, rstd, *, tm):
    c_in, n_pad = h.shape
    num_tiles = n_pad // tm

    flops = 6 * n_pad * c_in + 8 * n_pad
    bytes_accessed = 4 * (c_in * n_pad + 3 * c_in + 1 + n_pad)

    return pl.pallas_call(
        _final_kernel,
        grid=(num_tiles,),
        in_specs=[pl.BlockSpec((c_in, 1), lambda t: (0, 0)),
                  pl.BlockSpec((c_in, 1), lambda t: (0, 0)),
                  pl.BlockSpec((c_in, tm), lambda t: (0, t)),
                  pl.BlockSpec((c_in, 1), lambda t: (0, 0)),
                  pl.BlockSpec((1, 1), lambda t: (0, 0))],
        out_specs=pl.BlockSpec((1, tm), lambda t: (0, t)),
        out_shape=jax.ShapeDtypeStruct((1, n_pad), jnp.float32),
        compiler_params=pltpu.CompilerParams(dimension_semantics=("parallel",)),
        cost_estimate=pl.CostEstimate(flops=flops, transcendentals=n_pad,
                                      bytes_accessed=bytes_accessed),
    )(mean, rstd, h, wf, bf)


@functools.partial(jax.jit, static_argnames=("tm",))
def topnet_forward(x, params, tm=512):
    """x: (N, inputDim) f32.  params (PyTorch layout):
    [W0 (H,in), b0 (H,), ..., W_{L-1}, b_{L-1}, Wf (1,H), bf (1,)]."""
    n, _ = x.shape
    num_hidden = len(params) // 2 - 1

    tm = max(128, min(_round_up(tm, 128), _round_up(n, 128)))
    n_pad = _round_up(n, tm)

    # Layout plumbing: batch on lanes -> activations are (features, N_pad).
    h = jnp.pad(x.astype(jnp.float32).T, ((0, 0), (0, n_pad - n)))

    mean = rstd = None
    for l in range(num_hidden):
        w = params[2 * l].astype(jnp.float32)
        b = params[2 * l + 1].astype(jnp.float32).reshape(-1, 1)
        h, mean, rstd = _hidden_layer(h, w, b, mean, rstd,
                                      apply_bn=(l > 0), n_valid=n, tm=tm)

    wf = params[-2].astype(jnp.float32).reshape(-1, 1)   # (hidden, 1)
    bf = params[-1].astype(jnp.float32).reshape(1, 1)
    out = _final_layer(h, wf, bf, mean, rstd, tm=tm)     # (1, n_pad)
    return out[0, :n]                                    # .view(-1)


def topnet_reference(x, params):
    """Pure-JAX reference with the PyTorch module's exact forward semantics."""
    num_hidden = len(params) // 2 - 1
    hi = jax.lax.Precision.HIGHEST
    h = x.astype(jnp.float32)
    for l in range(num_hidden):
        w, b = params[2 * l], params[2 * l + 1]
        z = jnp.dot(h, w.T, precision=hi) + b
        mean = jnp.mean(z, axis=0)
        var = jnp.mean((z - mean) ** 2, axis=0)          # biased (training-mode BN)
        zn = (z - mean) * jax.lax.rsqrt(var + BN_EPS)
        h = jnp.where(zn >= 0.0, zn, LEAKY_SLOPE * zn)
    wf, bf = params[-2], params[-1]
    eta = jax.nn.sigmoid(jnp.dot(h, wf.T, precision=hi) + bf).reshape(-1)
    return (eta - 0.5) * 30.0


def init_params(key, input_dim, num_layers, num_neurons):
    """Hidden layers: xavier_normal_ weights, zero biases (as in __init__).
    Final Linear: PyTorch-default-style uniform(-1/sqrt(in), 1/sqrt(in))."""
    params = []
    c = input_dim
    for _ in range(num_layers):
        key, wk = jax.random.split(key)
        std = (2.0 / (c + num_neurons)) ** 0.5
        w = std * jax.random.normal(wk, (num_neurons, c), jnp.float32)
        params += [w, jnp.zeros((num_neurons,), jnp.float32)]
        c = num_neurons
    key, wk, bk = jax.random.split(key, 3)
    bound = 1.0 / (c ** 0.5)
    wf = jax.random.uniform(wk, (1, c), jnp.float32, -bound, bound)
    bf = jax.random.uniform(bk, (1,), jnp.float32, -bound, bound)
    params += [wf, bf]
    return params


if __name__ == "__main__":
    nn_settings = {"numLayers": 3, "numNeuronsPerLyr": 32}
    input_dim = 4
    batch = 200   # with tm=128 -> 2 batch tiles, last tile partially valid

    key = jax.random.PRNGKey(0)
    key, xk = jax.random.split(key)
    x = jax.random.normal(xk, (batch, input_dim), jnp.float32)
    params = init_params(key, input_dim, nn_settings["numLayers"],
                         nn_settings["numNeuronsPerLyr"])

    eta = topnet_forward(x, params, tm=128)
    eta = jax.block_until_ready(eta)
    assert eta.shape == (batch,), eta.shape
    assert bool(jnp.all(jnp.isfinite(eta)))

    ref = jax.block_until_ready(topnet_reference(x, params))
    max_err = float(jnp.max(jnp.abs(eta - ref)))
    assert max_err < 5e-3, f"max abs err {max_err}"

    print("KERNEL_OK")
</pallas_src>

<mosaic_0001>
module attributes {stable_mosaic.version = 11 : i64} {
  func.func @_hidden_kernel(%arg0: i32, %arg1: memref<4x128xf32, #tpu.memory_space<vmem>>, %arg2: memref<32x4xf32, #tpu.memory_space<vmem>>, %arg3: memref<32x1xf32, #tpu.memory_space<vmem>>, %arg4: memref<32x128xf32, #tpu.memory_space<vmem>>, %arg5: memref<1x32x1xf32, #tpu.memory_space<vmem>>, %arg6: memref<1x32x1xf32, #tpu.memory_space<vmem>>) attributes {dimension_semantics = [#tpu.dimension_semantics<parallel>], iteration_bounds = array<i64: 2>, scalar_prefetch = 0 : i64, scratch_operands = 0 : i64, tpu.core_type = #tpu.core_type<tc>, window_params = [{transform_indices = @transform_0, window_bounds = array<i64: 4, 128>}, {pipeline_mode = #tpu.pipeline_mode<synchronous>, transform_indices = @transform_1, window_bounds = array<i64: 32, 4>}, {pipeline_mode = #tpu.pipeline_mode<synchronous>, transform_indices = @transform_2, window_bounds = array<i64: 32, 1>}, {transform_indices = @transform_3, window_bounds = array<i64: 32, 128>}, {transform_indices = @transform_4, window_bounds = array<i64: 1, 32, 1>}, {transform_indices = @transform_5, window_bounds = array<i64: 1, 32, 1>}]} {
    %c0 = arith.constant 0 : index
    %c0_0 = arith.constant 0 : index
    %0 = vector.load %arg1[%c0, %c0_0] : memref<4x128xf32, #tpu.memory_space<vmem>>, vector<4x128xf32>
    %c0_1 = arith.constant 0 : index
    %c0_2 = arith.constant 0 : index
    %1 = vector.load %arg2[%c0_1, %c0_2] : memref<32x4xf32, #tpu.memory_space<vmem>>, vector<32x4xf32>
    %cst = arith.constant dense<0.000000e+00> : vector<32x128xf32>
    %2 = tpu.matmul %1, %0, %cst {dimension_numbers = #tpu.dot_dimension_numbers<[1], [0], [0], [1], [0, 0, 1, 1], [], []>} : vector<32x4xf32>, vector<4x128xf32>, vector<32x128xf32> -> vector<32x128xf32>
    %c0_3 = arith.constant 0 : index
    %c0_4 = arith.constant 0 : index
    %3 = vector.load %arg3[%c0_3, %c0_4] : memref<32x1xf32, #tpu.memory_space<vmem>>, vector<32x1xf32>
    %4 = vector.broadcast %3 : vector<32x1xf32> to vector<32x128xf32>
    %5 = arith.addf %2, %4 : vector<32x128xf32>
    %c0_5 = arith.constant 0 : index
    %c0_6 = arith.constant 0 : index
    %6 = vector.load %arg4[%c0_5, %c0_6] : memref<32x128xf32, #tpu.memory_space<vmem>>, vector<32x128xf32>
    tpu.vector_store %arg4[%c0_5, %c0_6], %5 {strides = array<i32>} : memref<32x128xf32, #tpu.memory_space<vmem>>, vector<32x128xf32>,
    %7 = tpu.iota {dimensions = array<i32: 1>} : vector<1x128xi32>
    %c128_i32 = arith.constant 128 : i32
    %8 = arith.muli %arg0, %c128_i32 : i32
    %9 = vector.broadcast %8 : i32 to vector<1x128xi32>
    %10 = arith.addi %7, %9 : vector<1x128xi32>
    %c200_i32 = arith.constant 200 : i32
    %11 = vector.broadcast %c200_i32 : i32 to vector<1x128xi32>
    %12 = arith.cmpi slt, %10, %11 : vector<1x128xi32>
    %13 = arith.extui %12 : vector<1x128xi1> to vector<1x128xi32>
    %14 = arith.sitofp %13 : vector<1x128xi32> to vector<1x128xf32>
    %15 = vector.broadcast %14 : vector<1x128xf32> to vector<32x128xf32>
    %16 = arith.mulf %5, %15 : vector<32x128xf32>
    %cst_7 = arith.constant dense<0.000000e+00> : vector<32xf32>
    %17 = vector.multi_reduction <add>, %16, %cst_7 [1] : vector<32x128xf32> to vector<32xf32>
    %18 = vector.shape_cast %17 : vector<32xf32> to vector<32x1xf32>
    %19 = vector.shape_cast %18 : vector<32x1xf32> to vector<1x32x1xf32>
    %c0_8 = arith.constant 0 : index
    %c0_9 = arith.constant 0 : index
    %c0_10 = arith.constant 0 : index
    %20 = vector.load %arg5[%c0_8, %c0_9, %c0_10] : memref<1x32x1xf32, #tpu.memory_space<vmem>>, vector<1x32x1xf32>
    tpu.vector_store %arg5[%c0_8, %c0_9, %c0_10], %19 {strides = array<i32>} : memref<1x32x1xf32, #tpu.memory_space<vmem>>, vector<1x32x1xf32>,
    %21 = arith.mulf %16, %5 : vector<32x128xf32>
    %cst_11 = arith.constant dense<0.000000e+00> : vector<32xf32>
    %22 = vector.multi_reduction <add>, %21, %cst_11 [1] : vector<32x128xf32> to vector<32xf32>
    %23 = vector.shape_cast %22 : vector<32xf32> to vector<32x1xf32>
    %24 = vector.shape_cast %23 : vector<32x1xf32> to vector<1x32x1xf32>
    %c0_12 = arith.constant 0 : index
    %c0_13 = arith.constant 0 : index
    %c0_14 = arith.constant 0 : index
    %25 = vector.load %arg6[%c0_12, %c0_13, %c0_14] : memref<1x32x1xf32, #tpu.memory_space<vmem>>, vector<1x32x1xf32>
    tpu.vector_store %arg6[%c0_12, %c0_13, %c0_14], %24 {strides = array<i32>} : memref<1x32x1xf32, #tpu.memory_space<vmem>>, vector<1x32x1xf32>,
    return
  }
  func.func @transform_0(%arg0: i32) -> (i32, i32) {
    %c0_i32 = arith.constant 0 : i32
    %c0_i32_0 = arith.constant 0 : i32
    return %c0_i32, %arg0 : i32, i32
  }
  func.func @transform_1(%arg0: i32) -> (i32, i32) {
    %c0_i32 = arith.constant 0 : i32
    %c0_i32_0 = arith.constant 0 : i32
    %c0_i32_1 = arith.constant 0 : i32
    return %c0_i32, %c0_i32_0 : i32, i32
  }
  func.func @transform_2(%arg0: i32) -> (i32, i32) {
    %c0_i32 = arith.constant 0 : i32
    %c0_i32_0 = arith.constant 0 : i32
    %c0_i32_1 = arith.constant 0 : i32
    return %c0_i32, %c0_i32_0 : i32, i32
  }
  func.func @transform_3(%arg0: i32) -> (i32, i32) {
    %c0_i32 = arith.constant 0 : i32
    %c0_i32_0 = arith.constant 0 : i32
    return %c0_i32, %arg0 : i32, i32
  }
  func.func @transform_4(%arg0: i32) -> (i32, i32, i32) {
    %c0_i32 = arith.constant 0 : i32
    %c0_i32_0 = arith.constant 0 : i32
    %c0_i32_1 = arith.constant 0 : i32
    return %arg0, %c0_i32, %c0_i32_0 : i32, i32, i32
  }
  func.func @transform_5(%arg0: i32) -> (i32, i32, i32) {
    %c0_i32 = arith.constant 0 : i32
    %c0_i32_0 = arith.constant 0 : i32
    %c0_i32_1 = arith.constant 0 : i32
    return %arg0, %c0_i32, %c0_i32_0 : i32, i32, i32
  }
}

module attributes {stable_mosaic.version = 11 : i64} {
  func.func @_final_kernel(%arg0: i32, %arg1: memref<32x1xf32, #tpu.memory_space<vmem>>, %arg2: memref<32x1xf32, #tpu.memory_space<vmem>>, %arg3: memref<32x128xf32, #tpu.memory_space<vmem>>, %arg4: memref<32x1xf32, #tpu.memory_space<vmem>>, %arg5: memref<1x1xf32, #tpu.memory_space<vmem>>, %arg6: memref<1x128xf32, #tpu.memory_space<vmem>>) attributes {dimension_semantics = [#tpu.dimension_semantics<parallel>], iteration_bounds = array<i64: 2>, scalar_prefetch = 0 : i64, scratch_operands = 0 : i64, tpu.core_type = #tpu.core_type<tc>, window_params = [{pipeline_mode = #tpu.pipeline_mode<synchronous>, transform_indices = @transform_0, window_bounds = array<i64: 32, 1>}, {pipeline_mode = #tpu.pipeline_mode<synchronous>, transform_indices = @transform_1, window_bounds = array<i64: 32, 1>}, {transform_indices = @transform_2, window_bounds = array<i64: 32, 128>}, {pipeline_mode = #tpu.pipeline_mode<synchronous>, transform_indices = @transform_3, window_bounds = array<i64: 32, 1>}, {pipeline_mode = #tpu.pipeline_mode<synchronous>, transform_indices = @transform_4, window_bounds = array<i64: 1, 1>}, {transform_indices = @transform_5, window_bounds = array<i64: 1, 128>}]} {
    %c0 = arith.constant 0 : index
    %c0_0 = arith.constant 0 : index
    %0 = vector.load %arg3[%c0, %c0_0] : memref<32x128xf32, #tpu.memory_space<vmem>>, vector<32x128xf32>
    %c0_1 = arith.constant 0 : index
    %c0_2 = arith.constant 0 : index
    %1 = vector.load %arg1[%c0_1, %c0_2] : memref<32x1xf32, #tpu.memory_space<vmem>>, vector<32x1xf32>
    %2 = vector.broadcast %1 : vector<32x1xf32> to vector<32x128xf32>
    %3 = arith.subf %0, %2 : vector<32x128xf32>
    %c0_3 = arith.constant 0 : index
    %c0_4 = arith.constant 0 : index
    %4 = vector.load %arg2[%c0_3, %c0_4] : memref<32x1xf32, #tpu.memory_space<vmem>>, vector<32x1xf32>
    %5 = vector.broadcast %4 : vector<32x1xf32> to vector<32x128xf32>
    %6 = arith.mulf %3, %5 : vector<32x128xf32>
    %cst = arith.constant 0.000000e+00 : f32
    %7 = vector.broadcast %cst : f32 to vector<32x128xf32>
    %8 = arith.cmpf oge, %6, %7 : vector<32x128xf32>
    %cst_5 = arith.constant 0.00999999977 : f32
    %9 = vector.broadcast %cst_5 : f32 to vector<32x128xf32>
    %10 = arith.mulf %9, %6 : vector<32x128xf32>
    %11 = arith.select %8, %6, %10 : vector<32x128xi1>, vector<32x128xf32>
    %c0_6 = arith.constant 0 : index
    %c0_7 = arith.constant 0 : index
    %12 = vector.load %arg4[%c0_6, %c0_7] : memref<32x1xf32, #tpu.memory_space<vmem>>, vector<32x1xf32>
    %13 = vector.broadcast %12 : vector<32x1xf32> to vector<32x128xf32>
    %14 = arith.mulf %11, %13 : vector<32x128xf32>
    %cst_8 = arith.constant dense<0.000000e+00> : vector<128xf32>
    %15 = vector.multi_reduction <add>, %14, %cst_8 [0] : vector<32x128xf32> to vector<128xf32>
    %16 = vector.shape_cast %15 : vector<128xf32> to vector<1x128xf32>
    %c0_9 = arith.constant 0 : index
    %c0_10 = arith.constant 0 : index
    %17 = vector.load %arg5[%c0_9, %c0_10] : memref<1x1xf32, #tpu.memory_space<vmem>>, vector<1x1xf32>
    %18 = vector.broadcast %17 : vector<1x1xf32> to vector<1x128xf32>
    %19 = arith.addf %16, %18 : vector<1x128xf32>
    %20 = arith.negf %19 : vector<1x128xf32>
    %21 = math.exp %20 : vector<1x128xf32>
    %cst_11 = arith.constant 1.000000e+00 : f32
    %22 = vector.broadcast %cst_11 : f32 to vector<1x128xf32>
    %23 = arith.addf %22, %21 : vector<1x128xf32>
    %24 = arith.divf %22, %23 : vector<1x128xf32>
    %cst_12 = arith.constant 5.000000e-01 : f32
    %25 = vector.broadcast %cst_12 : f32 to vector<1x128xf32>
    %26 = arith.subf %24, %25 : vector<1x128xf32>
    %cst_13 = arith.constant 3.000000e+01 : f32
    %27 = vector.broadcast %cst_13 : f32 to vector<1x128xf32>
    %28 = arith.mulf %26, %27 : vector<1x128xf32>
    %c0_14 = arith.constant 0 : index
    %c0_15 = arith.constant 0 : index
    %29 = vector.load %arg6[%c0_14, %c0_15] : memref<1x128xf32, #tpu.memory_space<vmem>>, vector<1x128xf32>
    tpu.vector_store %arg6[%c0_14, %c0_15], %28 {strides = array<i32>} : memref<1x128xf32, #tpu.memory_space<vmem>>, vector<1x128xf32>,
    return
  }
  func.func @transform_0(%arg0: i32) -> (i32, i32) {
    %c0_i32 = arith.constant 0 : i32
    %c0_i32_0 = arith.constant 0 : i32
    %c0_i32_1 = arith.constant 0 : i32
    return %c0_i32, %c0_i32_0 : i32, i32
  }
  func.func @transform_1(%arg0: i32) -> (i32, i32) {
    %c0_i32 = arith.constant 0 : i32
    %c0_i32_0 = arith.constant 0 : i32
    %c0_i32_1 = arith.constant 0 : i32
    return %c0_i32, %c0_i32_0 : i32, i32
  }
  func.func @transform_2(%arg0: i32) -> (i32, i32) {
    %c0_i32 = arith.constant 0 : i32
    %c0_i32_0 = arith.constant 0 : i32
    return %c0_i32, %arg0 : i32, i32
  }
  func.func @transform_3(%arg0: i32) -> (i32, i32) {
    %c0_i32 = arith.constant 0 : i32
    %c0_i32_0 = arith.constant 0 : i32
    %c0_i32_1 = arith.constant 0 : i32
    return %c0_i32, %c0_i32_0 : i32, i32
  }
  func.func @transform_4(%arg0: i32) -> (i32, i32) {
    %c0_i32 = arith.constant 0 : i32
    %c0_i32_0 = arith.constant 0 : i32
    %c0_i32_1 = arith.constant 0 : i32
    return %c0_i32, %c0_i32_0 : i32, i32
  }
  func.func @transform_5(%arg0: i32) -> (i32, i32) {
    %c0_i32 = arith.constant 0 : i32
    %c0_i32_0 = arith.constant 0 : i32
    return %c0_i32, %arg0 : i32, i32
  }
}

module attributes {stable_mosaic.version = 11 : i64} {
  func.func @_hidden_kernel(%arg0: i32, %arg1: memref<32x1xf32, #tpu.memory_space<vmem>>, %arg2: memref<32x1xf32, #tpu.memory_space<vmem>>, %arg3: memref<32x128xf32, #tpu.memory_space<vmem>>, %arg4: memref<32x32xf32, #tpu.memory_space<vmem>>, %arg5: memref<32x1xf32, #tpu.memory_space<vmem>>, %arg6: memref<32x128xf32, #tpu.memory_space<vmem>>, %arg7: memref<1x32x1xf32, #tpu.memory_space<vmem>>, %arg8: memref<1x32x1xf32, #tpu.memory_space<vmem>>) attributes {dimension_semantics = [#tpu.dimension_semantics<parallel>], iteration_bounds = array<i64: 2>, scalar_prefetch = 0 : i64, scratch_operands = 0 : i64, tpu.core_type = #tpu.core_type<tc>, window_params = [{pipeline_mode = #tpu.pipeline_mode<synchronous>, transform_indices = @transform_0, window_bounds = array<i64: 32, 1>}, {pipeline_mode = #tpu.pipeline_mode<synchronous>, transform_indices = @transform_1, window_bounds = array<i64: 32, 1>}, {transform_indices = @transform_2, window_bounds = array<i64: 32, 128>}, {pipeline_mode = #tpu.pipeline_mode<synchronous>, transform_indices = @transform_3, window_bounds = array<i64: 32, 32>}, {pipeline_mode = #tpu.pipeline_mode<synchronous>, transform_indices = @transform_4, window_bounds = array<i64: 32, 1>}, {transform_indices = @transform_5, window_bounds = array<i64: 32, 128>}, {transform_indices = @transform_6, window_bounds = array<i64: 1, 32, 1>}, {transform_indices = @transform_7, window_bounds = array<i64: 1, 32, 1>}]} {
    %c0 = arith.constant 0 : index
    %c0_0 = arith.constant 0 : index
    %0 = vector.load %arg3[%c0, %c0_0] : memref<32x128xf32, #tpu.memory_space<vmem>>, vector<32x128xf32>
    %c0_1 = arith.constant 0 : index
    %c0_2 = arith.constant 0 : index
    %1 = vector.load %arg1[%c0_1, %c0_2] : memref<32x1xf32, #tpu.memory_space<vmem>>, vector<32x1xf32>
    %2 = vector.broadcast %1 : vector<32x1xf32> to vector<32x128xf32>
    %3 = arith.subf %0, %2 : vector<32x128xf32>
    %c0_3 = arith.constant 0 : index
    %c0_4 = arith.constant 0 : index
    %4 = vector.load %arg2[%c0_3, %c0_4] : memref<32x1xf32, #tpu.memory_space<vmem>>, vector<32x1xf32>
    %5 = vector.broadcast %4 : vector<32x1xf32> to vector<32x128xf32>
    %6 = arith.mulf %3, %5 : vector<32x128xf32>
    %cst = arith.constant 0.000000e+00 : f32
    %7 = vector.broadcast %cst : f32 to vector<32x128xf32>
    %8 = arith.cmpf oge, %6, %7 : vector<32x128xf32>
    %cst_5 = arith.constant 0.00999999977 : f32
    %9 = vector.broadcast %cst_5 : f32 to vector<32x128xf32>
    %10 = arith.mulf %9, %6 : vector<32x128xf32>
    %11 = arith.select %8, %6, %10 : vector<32x128xi1>, vector<32x128xf32>
    %c0_6 = arith.constant 0 : index
    %c0_7 = arith.constant 0 : index
    %12 = vector.load %arg4[%c0_6, %c0_7] : memref<32x32xf32, #tpu.memory_space<vmem>>, vector<32x32xf32>
    %cst_8 = arith.constant dense<0.000000e+00> : vector<32x128xf32>
    %13 = tpu.matmul %12, %11, %cst_8 {dimension_numbers = #tpu.dot_dimension_numbers<[1], [0], [0], [1], [0, 0, 1, 1], [], []>} : vector<32x32xf32>, vector<32x128xf32>, vector<32x128xf32> -> vector<32x128xf32>
    %c0_9 = arith.constant 0 : index
    %c0_10 = arith.constant 0 : index
    %14 = vector.load %arg5[%c0_9, %c0_10] : memref<32x1xf32, #tpu.memory_space<vmem>>, vector<32x1xf32>
    %15 = vector.broadcast %14 : vector<32x1xf32> to vector<32x128xf32>
    %16 = arith.addf %13, %15 : vector<32x128xf32>
    %c0_11 = arith.constant 0 : index
    %c0_12 = arith.constant 0 : index
    %17 = vector.load %arg6[%c0_11, %c0_12] : memref<32x128xf32, #tpu.memory_space<vmem>>, vector<32x128xf32>
    tpu.vector_store %arg6[%c0_11, %c0_12], %16 {strides = array<i32>} : memref<32x128xf32, #tpu.memory_space<vmem>>, vector<32x128xf32>,
    %18 = tpu.iota {dimensions = array<i32: 1>} : vector<1x128xi32>
    %c128_i32 = arith.constant 128 : i32
    %19 = arith.muli %arg0, %c128_i32 : i32
    %20 = vector.broadcast %19 : i32 to vector<1x128xi32>
    %21 = arith.addi %18, %20 : vector<1x128xi32>
    %c200_i32 = arith.constant 200 : i32
    %22 = vector.broadcast %c200_i32 : i32 to vector<1x128xi32>
    %23 = arith.cmpi slt, %21, %22 : vector<1x128xi32>
    %24 = arith.extui %23 : vector<1x128xi1> to vector<1x128xi32>
    %25 = arith.sitofp %24 : vector<1x128xi32> to vector<1x128xf32>
    %26 = vector.broadcast %25 : vector<1x128xf32> to vector<32x128xf32>
    %27 = arith.mulf %16, %26 : vector<32x128xf32>
    %cst_13 = arith.constant dense<0.000000e+00> : vector<32xf32>
    %28 = vector.multi_reduction <add>, %27, %cst_13 [1] : vector<32x128xf32> to vector<32xf32>
    %29 = vector.shape_cast %28 : vector<32xf32> to vector<32x1xf32>
    %30 = vector.shape_cast %29 : vector<32x1xf32> to vector<1x32x1xf32>
    %c0_14 = arith.constant 0 : index
    %c0_15 = arith.constant 0 : index
    %c0_16 = arith.constant 0 : index
    %31 = vector.load %arg7[%c0_14, %c0_15, %c0_16] : memref<1x32x1xf32, #tpu.memory_space<vmem>>, vector<1x32x1xf32>
    tpu.vector_store %arg7[%c0_14, %c0_15, %c0_16], %30 {strides = array<i32>} : memref<1x32x1xf32, #tpu.memory_space<vmem>>, vector<1x32x1xf32>,
    %32 = arith.mulf %27, %16 : vector<32x128xf32>
    %cst_17 = arith.constant dense<0.000000e+00> : vector<32xf32>
    %33 = vector.multi_reduction <add>, %32, %cst_17 [1] : vector<32x128xf32> to vector<32xf32>
    %34 = vector.shape_cast %33 : vector<32xf32> to vector<32x1xf32>
    %35 = vector.shape_cast %34 : vector<32x1xf32> to vector<1x32x1xf32>
    %c0_18 = arith.constant 0 : index
    %c0_19 = arith.constant 0 : index
    %c0_20 = arith.constant 0 : index
    %36 = vector.load %arg8[%c0_18, %c0_19, %c0_20] : memref<1x32x1xf32, #tpu.memory_space<vmem>>, vector<1x32x1xf32>
    tpu.vector_store %arg8[%c0_18, %c0_19, %c0_20], %35 {strides = array<i32>} : memref<1x32x1xf32, #tpu.memory_space<vmem>>, vector<1x32x1xf32>,
    return
  }
  func.func @transform_0(%arg0: i32) -> (i32, i32) {
    %c0_i32 = arith.constant 0 : i32
    %c0_i32_0 = arith.constant 0 : i32
    %c0_i32_1 = arith.constant 0 : i32
    return %c0_i32, %c0_i32_0 : i32, i32
  }
  func.func @transform_1(%arg0: i32) -> (i32, i32) {
    %c0_i32 = arith.constant 0 : i32
    %c0_i32_0 = arith.constant 0 : i32
    %c0_i32_1 = arith.constant 0 : i32
    return %c0_i32, %c0_i32_0 : i32, i32
  }
  func.func @transform_2(%arg0: i32) -> (i32, i32) {
    %c0_i32 = arith.constant 0 : i32
    %c0_i32_0 = arith.constant 0 : i32
    return %c0_i32, %arg0 : i32, i32
  }
  func.func @transform_3(%arg0: i32) -> (i32, i32) {
    %c0_i32 = arith.constant 0 : i32
    %c0_i32_0 = arith.constant 0 : i32
    %c0_i32_1 = arith.constant 0 : i32
    return %c0_i32, %c0_i32_0 : i32, i32
  }
  func.func @transform_4(%arg0: i32) -> (i32, i32) {
    %c0_i32 = arith.constant 0 : i32
    %c0_i32_0 = arith.constant 0 : i32
    %c0_i32_1 = arith.constant 0 : i32
    return %c0_i32, %c0_i32_0 : i32, i32
  }
  func.func @transform_5(%arg0: i32) -> (i32, i32) {
    %c0_i32 = arith.constant 0 : i32
    %c0_i32_0 = arith.constant 0 : i32
    return %c0_i32, %arg0 : i32, i32
  }
  func.func @transform_6(%arg0: i32) -> (i32, i32, i32) {
    %c0_i32 = arith.constant 0 : i32
    %c0_i32_0 = arith.constant 0 : i32
    %c0_i32_1 = arith.constant 0 : i32
    return %arg0, %c0_i32, %c0_i32_0 : i32, i32, i32
  }
  func.func @transform_7(%arg0: i32) -> (i32, i32, i32) {
    %c0_i32 = arith.constant 0 : i32
    %c0_i32_0 = arith.constant 0 : i32
    %c0_i32_1 = arith.constant 0 : i32
    return %arg0, %c0_i32, %c0_i32_0 : i32, i32, i32
  }
}

</mosaic_0001>

<bundles_post_ra>
// kernel: topnet_forward.7
= control target key start
LH: loop header
LB: loop body
LE: loop exit
PB: predicated region body
PF: predicated region fallthrough
CT: control target
= control target key end

     0   :  { %s762_s0 = inlined_call_operand.vmem [shape: f32[32,1], index: 0, kind: input, shape index: {}]   ;;  %s763_s1 = inlined_call_operand.vmem [shape: f32[32,1], index: 1, kind: input, shape index: {}]   ;;  %s764_s2 = inlined_call_operand.vmem [shape: f32[32,256], index: 2, kind: input, shape index: {}]   ;;  %s765_s3 = inlined_call_operand.vmem [shape: f32[32,1], index: 3, kind: input, shape index: {}]   ;;  %s766_s4 = inlined_call_operand.<no memory space> [shape: f32[1,1], index: 4, kind: input, shape index: {}]   ;;  %s767_s5 = inlined_call_operand.hbm [shape: f32[1,256], index: 5, kind: output, shape index: {}]  }
   0x1   :  { %v10_v0 = vstv %s766_s4 }
   0x2   :  { %11 = vst [vmem:[#allocation2] sm:$0x1] %v10_v0 }
   0x3   :  { %12 = vsyncpa [#allocation5], 0 }
   0x4   :  { %14 = vsyncpa [#allocation5 + $0x1], 0  ;;  %s629_s20 = smov 0   ;;  %s631_s21 = smov 0  }
   0x5   :  { %s633_s22 = smov 0   ;;  %s635_s23 = smov 0  }
   0x6 LB: > { %s473_s4 = sadd.s32 4294967295, %s592_s23   ;;  %s474_s24 = sadd.s32 4294967294, %s592_s23   ;;  %s592_s23 = sphi %s635_s23, %s775_s23   ;;  %s588_s22 = sphi %s633_s22, %s774_s22   ;;  %s584_s21 = sphi %s631_s21, %s773_s21   ;;  %s580_s20 = sphi %s629_s20, %s772_s20  }
   0x7   : > { %s652_s25 = sadd.s32 1, %s592_s23   ;;  %s69_s26 = sadd.s32 1, %s588_s22 }
   0x8   : > { %s66_s27 = ssub.s32 %s592_s23, %s652_s25  ;;  %p76_p0 = scmp.ne.s32.totalorder %s588_s22, %s584_s21 }
   0x9   : > { %p67_p1 = scmp.eq.s32.totalorder %s66_s27, 0  ;;  %p77_p2 = scmp.eq.s32.totalorder %s592_s23, 0 }
   0xa   : > { %p148_p3 = scmp.eq.s32.totalorder %s473_s4, 1  ;;  %p153_p4 = scmp.ne.s32.totalorder %s584_s21, %s580_s20 }
   0xb   : > { %s665_s28 = scalar_select %p67_p1, %s588_s22, %s69_s26  }
   0xc   : > { %p78_p5 = por %p77_p2, %p76_p0  ;;  %p667_p6 = por %p148_p3, %p76_p0 }
   0xd   : > { %p154_p7 = scmp.eq.s32.totalorder %s474_s24, 1  ;;  %p768_p9 = scmp.ge.s32.totalorder %s592_s23, 2 }
   0xf   : > { %p671_p8 = por %p154_p7, %p153_p4  ;;  %182 = sbr.rel (%p768_p9) target bundleno = 26 (0x1a), region = 32 }
  0x14   : > { %185 = sbr.rel (!%p78_p5) target bundleno = 26 (0x1a), region = 36  ;;  %s187_s6 = sand.u32 (%p78_p5), 1, %s588_s22  }
  0x15   : > { %s478_s7 = sshll.u32 (%p78_p5), %s592_s23, 3  ;;  %s477_s8 = sshll.u32 (%p78_p5), %s187_s6, 5 }
  0x16   : > { %s191_s11 = scalar_lea.vmem (%p78_p5), %s764_s2, %s478_s7  ;;  %s189_s12 = scalar_lea.vmem (%p78_p5), [#allocation3], %s477_s8 }
  0x17   : > { %v226_v1 = vld [vmem:[%s191_s11] sm:$0xff] (%p78_p5)  ;;  %v228_v2 = vld [vmem:[%s191_s11 + $0x10] sm:$0xff] (%p78_p5) }
  0x18   : > { %v230_v3 = vld [vmem:[%s191_s11 + $0x20] sm:$0xff] (%p78_p5)  ;;  %227 = vst [vmem:[%s189_s12] sm:$0xff] (%p78_p5), %v226_v1  ;;  %229 = vst [vmem:[%s189_s12 + $0x8] sm:$0xff] (%p78_p5), %v228_v2  ;;  %v232_v4 = vld [vmem:[%s191_s11 + $0x30] sm:$0xff] (%p78_p5) }
  0x19   : > { %231 = vst [vmem:[%s189_s12 + $0x10] sm:$0xff] %v230_v3  ;;  %233 = vst [vmem:[%s189_s12 + $0x18] sm:$0xff] %v232_v4 }
  0x1a PF: > { %p479_p10 = scmp.ge.s32.totalorder %s592_s23, 1  ;;  %p238_p11 = scmp.lt.s32.totalorder %s592_s23, 3 }
  0x1c   : > { %p239_p12 = pnand %p479_p10, %p238_p11 }
  0x1d   : > { %s722_s24 = sand.u32 (!%p239_p12), 1, %s584_s21   ;;  %s483_s6 = sshll.u32 (!%p239_p12), %s473_s4, 4 }
  0x1e   : > { %242 = sbr.rel (%p239_p12) target bundleno = 250 (0xfa), region = 74  ;;  %s480_s26 = sshll.u32 (!%p239_p12), %s722_s24, 5 }
  0x1f   : > { %s247_s27 = scalar_lea.vmem (!%p239_p12), [#allocation3], %s480_s26  ;;  %s270_s7 = scalar_lea.vmem (!%p239_p12), [#allocation4], %s722_s24 }
  0x20   : > { %s413_s8 = sshll.u32 (!%p239_p12), %s270_s7, 4  ;;  %s411_s11 = scalar_lea.hbm (!%p239_p12), %s767_s5, %s483_s6  ;;  %s414_s8 = int_to_ptr.vmem [resolvable:$true] %s413_s8 }
  0x21   : > { %s401_s12 = scalar_lea.sflag (!%p239_p12), [#allocation5], %s722_s24  ;;  %s532_s13 = scalar_lea.vmem (!%p239_p12), %s414_s8, 16 }
  0x22   : > { %p533_p13 = scmp.ne.s32.totalorder (!%p239_p12), %s414_s8, %s532_s13  ;;  %s595_s14 = smov (!%p239_p12), [#allocation4]  }
  0x23   : > { %v277_v5 = vld [vmem:[%s762_s0 + $0x10] sm:$0xff]  ;;  %v275_v6 = vld [vmem:[%s762_s0] sm:$0xff]  ;;  %v594_v7 = vmov 0   ;;  %v276_v9 = vld [vmem:[%s762_s0 + $0x8] sm:$0xff]  ;;  %v386_v58 = vlaneseq  ;;  %s536_s15 = sshll.u32 %s595_s14, 4  ;;  %s537_s15 = int_to_ptr.vmem [resolvable:$false] %s536_s15 }
  0x24   : > { %527 = vset.pattern.permute.xlu1 %v594_v7  ;;  %526 = vset.pattern.permute.xlu0 %v594_v7  ;;  %v303_v8 = vld [vmem:[%s763_s1] sm:$0xff]  ;;  %v278_v10 = vld [vmem:[%s762_s0 + $0x18] sm:$0xff]  ;;  %v304_v11 = vld [vmem:[%s763_s1 + $0x8] sm:$0xff]  ;;  %p534_p0 = pnand %p533_p13, %p667_p6  ;;  %s538_s4 = scalar_lea.vmem %s537_s15, 32 }
  0x25   : > { %291 = vperm.xlu1 %527, %v277_v5   ;;  %281 = vperm.xlu0 %526, %v275_v6   ;;  %v306_v12 = vld [vmem:[%s763_s1 + $0x18] sm:$0xff]  ;;  %v305_v13 = vld [vmem:[%s763_s1 + $0x10] sm:$0xff]  ;;  %v344_v14 = vld [vmem:[%s765_s3 + $0x8] sm:$0xff]  ;;  %v387_v61 = vshrl.u32 %v386_v58, 7  ;;  %p539_p2 = scmp.lt.s32.totalorder %s414_s8, %s537_s15  ;;  %p540_p3 = scmp.lt.s32.totalorder %s538_s4, %s532_s13 }
  0x26   : > { %v343_v15 = vld [vmem:[%s765_s3] sm:$0xff]  ;;  %v346_v16 = vld [vmem:[%s765_s3 + $0x18] sm:$0xff]  ;;  %v345_v17 = vld [vmem:[%s765_s3 + $0x10] sm:$0xff]  ;;  %p535_p1 = pneg %p534_p0 }
  0x27   : > { %v380_v18 = vld [vmem:[#allocation2] sm:$0x1]  ;;  %v271_v21 = vld [vmem:[%s247_s27] sm:$0xff]  ;;  %v272_v24 = vld [vmem:[%s247_s27 + $0x8] sm:$0xff]  ;;  %v388_v63 = vsub.s32 0, %v387_v61  ;;  %p541_p4 = por %p540_p3, %p539_p2 }
  0x28   : > { %v273_v27 = vld [vmem:[%s247_s27 + $0x10] sm:$0xff]  ;;  %v274_v31 = vld [vmem:[%s247_s27 + $0x18] sm:$0xff] }
  0x29   : > { %309 = vperm.xlu1 %527, %v303_v8   ;;  %286 = vperm.xlu0 %526, %v276_v9   ;;  %p542_p5 = pnand %p541_p4, %p535_p1 }
  0x2d   : > { %296 = vperm.xlu1 %527, %v278_v10   ;;  %314 = vperm.xlu0 %526, %v304_v11  }
  0x31   : > { %324 = vperm.xlu1 %527, %v306_v12   ;;  %319 = vperm.xlu0 %526, %v305_v13  }
  0x35   : > { %354 = vperm.xlu1 %527, %v344_v14   ;;  %349 = vperm.xlu0 %526, %v343_v15  }
  0x39   : > { %364 = vperm.xlu1 %527, %v346_v16   ;;  %359 = vperm.xlu0 %526, %v345_v17  }
  0x3d   : > { %383 = vperm.xlu0 %526, %v380_v18  }
  0xa0   : > { %v292_v19 = vpop.permute.xlu1 %291  ;;  %v282_v20 = vpop.permute.xlu0 %281 }
  0xa1   : > { %v299_v25 = vsub.f32 %v271_v21, %v282_v20  ;;  %v301_v33 = vsub.f32 %v273_v27, %v292_v19 }
  0xa4   : > { %v310_v22 = vpop.permute.xlu1 %309  ;;  %v287_v23 = vpop.permute.xlu0 %286 }
  0xa5   : > { %v300_v26 = vsub.f32 %v272_v24, %v287_v23  ;;  %v327_v28 = vmul.f32 %v310_v22, %v299_v25 }
  0xa7   : > { %v335_v34 = vmul.f32 0.01, %v327_v28  ;;  %vm331_vm1 = vcmp.ge.f32.partialorder %v327_v28, 0.0 }
  0xa8   : > { %v297_v29 = vpop.permute.xlu1 %296  ;;  %v315_v30 = vpop.permute.xlu0 %314 }
  0xa9   : > { %v328_v32 = vmul.f32 %v315_v30, %v300_v26  ;;  %v302_v35 = vsub.f32 %v274_v31, %v297_v29  ;;  %v339_v45 = vsel %vm331_vm1, %v327_v28, %v335_v34 }
  0xab   : > { %v336_v36 = vmul.f32 0.01, %v328_v32  ;;  %vm332_vm0 = vcmp.ge.f32.partialorder %v328_v32, 0.0 }
  0xac   : > { %v325_v37 = vpop.permute.xlu1 %324  ;;  %v320_v38 = vpop.permute.xlu0 %319 }
  0xad   : > { %v329_v39 = vmul.f32 %v320_v38, %v301_v33  ;;  %v330_v40 = vmul.f32 %v325_v37, %v302_v35  ;;  %v340_v43 = vsel %vm332_vm0, %v328_v32, %v336_v36 }
  0xaf   : > { %v337_v41 = vmul.f32 0.01, %v329_v39  ;;  %vm333_vm2 = vcmp.ge.f32.partialorder %v329_v39, 0.0  ;;  %v338_v48 = vmul.f32 0.01, %v330_v40  ;;  %vm334_vm3 = vcmp.ge.f32.partialorder %v330_v40, 0.0 }
  0xb0   : > { %v355_v42 = vpop.permute.xlu1 %354  ;;  %v350_v44 = vpop.permute.xlu0 %349 }
  0xb1   : > { %v368_v46 = vmul.f32 %v355_v42, %v340_v43  ;;  %v367_v47 = vmul.f32 %v350_v44, %v339_v45  ;;  %v341_v51 = vsel %vm333_vm2, %v329_v39, %v337_v41  ;;  %v342_v54 = vsel %vm334_vm3, %v330_v40, %v338_v48 }
  0xb3   : > { %v371_v52 = vadd.f32 %v368_v46, %v367_v47 }
  0xb4   : > { %v365_v49 = vpop.permute.xlu1 %364  ;;  %v360_v50 = vpop.permute.xlu0 %359 }
  0xb5   : > { %v369_v53 = vmul.f32 %v360_v50, %v341_v51  ;;  %v370_v55 = vmul.f32 %v365_v49, %v342_v54 }
  0xb7   : > { %v372_v56 = vadd.f32 %v371_v52, %v369_v53 }
  0xb8   : > { %v384_v1 = vpop.permute.xlu0 %383 }
  0xb9   : > { %v373_v57 = vadd.f32 %v372_v56, %v370_v55  ;;  %v389_v4 = vrot.slane %v384_v1, %v388_v63 }
  0xbb   : > { %v374_v59 = vrot.slane %v373_v57, 4 }
  0xbd   : > { %v375_v60 = vadd.f32 %v374_v59, %v373_v57 }
  0xbf   : > { %v376_v62 = vrot.slane %v375_v60, 2 }
  0xc1   : > { %v377_v0 = vadd.f32 %v376_v62, %v375_v60 }
  0xc3   : > { %v378_v2 = vrot.slane %v377_v0, 1 }
  0xc5   : > { %v379_v3 = vadd.f32 %v378_v2, %v377_v0 }
  0xc7   : > { %v390_v5 = vadd.f32 %v389_v4, %v379_v3 }
  0xc9   : > { %v481_v6 = vmul.f32 -1.442695, %v390_v5 }
  0xcb   : > { %528 = vpow2.f32 %v481_v6 }
  0xd8   : > { %v529_v7 = vpop.eup %528 }
  0xd9   : > { %v394_v8 = vadd.f32 1.0, %v529_v7 }
  0xdb   : > { %530 = vrcp.f32 %v394_v8 }
  0xe8   : > { %v531_v9 = vpop.eup %530 }
  0xe9   : > { %v482_v10 = vadd.f32 -0.5, %v531_v9 }
  0xeb   : > { %v398_v11 = vmul.f32 30.0, %v482_v10 }
  0xed   : > { %399 = vst [vmem:[%s270_s7] sm:$0x1] %v398_v11 }
  0xee   : > { %545 = shalt.err (!%p542_p5)
}
  0xef   : > { %s546_s16 = scalar_lea.hbm %s411_s11, 16  ;;  %s550_s19 = scalar_lea.hbm %s767_s5, 32 }
  0xf0   : > { %p547_p7 = scmp.ne.s32.totalorder %s411_s11, %s546_s16  ;;  %p551_p12 = scmp.lt.s32.totalorder %s411_s11, %s767_s5 }
  0xf1   : > { %p552_p13 = scmp.lt.s32.totalorder %s550_s19, %s546_s16 }
  0xf2   : > { %p548_p10 = pnand %p547_p7, %p667_p6 }
  0xf3   : > { %p553_p0 = por %p552_p13, %p551_p12 }
  0xf4   : > { %p549_p11 = pneg %p548_p10 }
  0xf6   : > { %p554_p9 = pnand %p553_p0, %p549_p11 }
  0xf8   : > { %557 = shalt.err (!%p554_p9)
}
  0xf9   : > { %486 = dma.vmem_to_hbm [thread:$0]  (%p667_p6), %s414_s8, 16, %s411_s11, %s401_s12  }
  0xfa PF: > { %s425_s27 = sand.u32 1, %s580_s20   ;;  %p771_p1 = scmp.ge.s32.totalorder %s592_s23, 2 }
  0xfb   : > { %s426_s6 = scalar_lea.sflag [#allocation5], %s425_s27 }
  0xfc   : > { %p489_p2 = pnand %p771_p1, %p671_p8 }
  0xfe   : > { %p490_p3 = pneg %p489_p2 }
 0x100   : > { %575 = dma.done.wait (%p490_p3), %s426_s6, 16  }
 0x101   : > { %577 = vsyncadd (%p490_p3), %s426_s6, 4294967280  ;;  %p17_p9 = scmp.ge.s32.totalorder %s652_s25, 4   ;;  %s772_s20 = smov %s584_s21 }
 0x102   : > { %s773_s21 = smov %s588_s22  ;;  %s774_s22 = smov %s665_s28 }
 0x103   : > { %s775_s23 = smov %s652_s25  ;;  %19 = sbr.rel (!%p17_p9) target bundleno = 6 (0x6), region = 118 }
 0x108   :  { %430 = vsyncpa [#allocation5], 1 }
 0x109   :  { %432 = vsyncpa [#allocation5 + $0x1], 1 }

// kernel: topnet_forward.4
= control target key start
LH: loop header
LB: loop body
LE: loop exit
PB: predicated region body
PF: predicated region fallthrough
CT: control target
= control target key end

     0   :  { %s710_s18 = smov 0   ;;  %s712_s19 = smov 0   ;;  %s818_s0 = inlined_call_operand.vmem [shape: f32[4,256], index: 0, kind: input, shape index: {}]   ;;  %s819_s1 = inlined_call_operand.vmem [shape: f32[32,4], index: 1, kind: input, shape index: {}]   ;;  %s820_s2 = inlined_call_operand.vmem [shape: f32[32,1], index: 2, kind: input, shape index: {}]   ;;  %s821_s3 = inlined_call_operand.vmem [shape: f32[32,256], index: 3, kind: output, shape index: {0}]   ;;  %s822_s4 = inlined_call_operand.vmem [shape: f32[2,32,1], index: 4, kind: output, shape index: {1}]   ;;  %s823_s5 = inlined_call_operand.vmem [shape: f32[2,32,1], index: 5, kind: output, shape index: {2}]  }
   0x1   :  { %s714_s20 = smov 0  }
   0x2 LB: > { %s723_s21 = sadd.s32 4294967295, %s676_s20   ;;  %s725_s22 = sadd.s32 1, %s676_s20   ;;  %s676_s20 = sphi %s714_s20, %s827_s20   ;;  %s672_s19 = sphi %s712_s19, %s826_s19   ;;  %s668_s18 = sphi %s710_s18, %s825_s18  }
   0x3   : > { %s88_s23 = ssub.s32 %s676_s20, %s725_s22  ;;  %s91_s24 = sadd.s32 1, %s672_s19 }
   0x4   : > { %p89_p0 = scmp.eq.s32.totalorder %s88_s23, 0  ;;  %p101_p1 = scmp.ne.s32.totalorder %s672_s19, %s668_s18 }
   0x5   : > { %p102_p2 = scmp.eq.s32.totalorder %s723_s21, 1  ;;  %p591_p3 = scmp.ge.s32.totalorder %s676_s20, 1 }
   0x6   : > { %s733_s25 = scalar_select %p89_p0, %s672_s19, %s91_s24  }
   0x7   : > { %p735_p4 = por %p102_p2, %p101_p1  ;;  %p191_p5 = scmp.lt.s32.totalorder %s676_s20, 3 }
   0x9   : > { %p192_p6 = pnand %p591_p3, %p191_p5 }
   0xa   : > { %p227_p7 = scmp.lt.s32.totalorder (!%p192_p6), %s723_s21, 1  ;;  %s603_s29 = sshll.u32 (!%p192_p6), %s723_s21, 7 }
   0xb   : > { %195 = sbr.rel (%p192_p6) target bundleno = 375 (0x177), region = 32  ;;  %s210_s30 = sand.u32 (!%p192_p6), 1, %s668_s18  }
   0xc   : > { %s592_s6 = sshll.u32 (!%p192_p6), %s210_s30, 5 }
   0xd   : > { %s777_s7 = scalar_lea.vmem (!%p192_p6), [#allocation2], %s592_s6 }
  0x10   : > { %v242_v0 = vld [vmem:[%s819_s1] sm:$0xff]  ;;  %vm270_vm0 = vcmask 31744   ;;  %v244_v1 = vld [vmem:[%s819_s1 + $0x10] sm:$0xff]  ;;  %s752_s8 = scalar_select %p227_p7, %s723_s21, 1  ;;  %v678_v3 = vmov 0   ;;  %vm283_vm1 = vcmask 1043456   ;;  %v376_v10 = vlaneseq }
  0x11   : > { %618 = vmatprep.mubr.msk.f32.mxu0 %vm270_vm0, %v242_v0  ;;  %621 = vmatprep.mubr.msk.f32.mxu1 %vm270_vm0, %v244_v1  ;;  %v248_v2 = vld [vmem:[%s820_s2 + $0x10] sm:$0xff]  ;;  %v246_v4 = vld [vmem:[%s820_s2] sm:$0xff]  ;;  %v243_v6 = vld [vmem:[%s819_s1 + $0x8] sm:$0xff]  ;;  %v379_v12 = vstv %s603_s29  ;;  %v679_v20 = vmov 0.0   ;;  %vm396_vm3 = vcmask 7168  }
  0x12   : > { %653 = vset.pattern.permute.xlu1 %v678_v3  ;;  %652 = vset.pattern.permute.xlu0 %v678_v3  ;;  %s593_s11 = sshll.u32 %s752_s8, 2  ;;  %v245_v7 = vld [vmem:[%s819_s1 + $0x18] sm:$0xff]  ;;  %v247_v9 = vld [vmem:[%s820_s2 + $0x8] sm:$0xff]  ;;  %v377_v11 = vand.u32 127, %v376_v10  ;;  %s609_s18 = sshll.u32 %s752_s8, 5 }
  0x13   : > { %262 = vperm.xlu1 %653, %v248_v2   ;;  %252 = vperm.xlu0 %652, %v246_v4   ;;  %s230_s14 = scalar_lea.vmem %s818_s0, %s593_s11  ;;  %v249_v8 = vld [vmem:[%s820_s2 + $0x18] sm:$0xff]  ;;  %s235_s11 = scalar_lea.vmem %s822_s4, %s609_s18 }
  0x14   : > { %v241_v5 = vld [vmem:[%s230_s14] sm:$0xf]  ;;  %v380_v15 = vadd.s32 %v379_v12, %v377_v11  ;;  %s240_s14 = scalar_lea.vmem %s823_s5, %s609_s18  ;;  %s606_s8 = sshll.u32 (%p735_p4), %s723_s21, 3 }
  0x15   : > { %616 = vmatprep.subr.msk.mxu0 %vm283_vm1, %v241_v5  ;;  %624 = vmatprep.subr.msk.mxu1 %vm283_vm1, %v241_v5  ;;  %s435_s17 = scalar_lea.vmem (%p735_p4), %s821_s3, %s606_s8 }
  0x16   : > { %617 = vmatpush3.msk.msra.mxu0 %vm283_vm1, %v241_v5  ;;  %625 = vmatpush3.msk.msra.mxu1 %vm283_vm1, %v241_v5  ;;  %vm381_vm2 = vcmp.lt.s32.totalorder %v380_v15, 200 }
  0x17   : > { %619 = vmatmul.mubr.msk.f32.vlgmr.msra.gmra.mxu0 %vm270_vm0, %v243_v6  ;;  %622 = vmatmul.mubr.msk.f32.vlgmr.msra.gmra.mxu1 %vm270_vm0, %v245_v7  ;;  %v604_v21 = vsel %vm381_vm2, 1.0, %v679_v20 }
  0x18   : > { %267 = vperm.xlu1 %653, %v249_v8   ;;  %257 = vperm.xlu0 %652, %v247_v9  }
  0x8e   : > { %v253_v13 = vpop.permute.xlu0 %252  ;;  %v263_v14 = vpop.permute.xlu1 %262 }
  0x93   : > { %v258_v16 = vpop.permute.xlu0 %257  ;;  %v268_v17 = vpop.permute.xlu1 %267 }
  0xd7   : > { %v620_v18 = vpop.f32.mrf.mxu0  ;;  %v623_v19 = vpop.f32.mrf.mxu1 }
  0xd8   : > { %v359_v22 = vadd.f32 %v620_v18, %v258_v16  ;;  %v369_v23 = vadd.f32 %v623_v19, %v268_v17 }
  0xd9   : > { %v353_v24 = vpop.f32.mrf.mxu0  ;;  %v363_v25 = vpop.f32.mrf.mxu1 }
  0xda   : > { %373 = vst [vmem:[%s777_s7 + $0x8] sm:$0xff] %v359_v22  ;;  %375 = vst [vmem:[%s777_s7 + $0x18] sm:$0xff] %v369_v23  ;;  %v354_v26 = vadd.f32 %v353_v24, %v253_v13  ;;  %v364_v27 = vadd.f32 %v363_v25, %v263_v14  ;;  %v387_v28 = vmul.f32 %v604_v21, %v369_v23 }
  0xdb   : > { %v385_v29 = vmul.f32 %v604_v21, %v359_v22 }
  0xdc   : > { %372 = vst [vmem:[%s777_s7] sm:$0xff] %v354_v26  ;;  %374 = vst [vmem:[%s777_s7 + $0x10] sm:$0xff] %v364_v27  ;;  %394 = vadd.xlane.f32.xlu0 %v387_v28  ;;  %v384_v30 = vmul.f32 %v604_v21, %v354_v26  ;;  %v386_v32 = vmul.f32 %v604_v21, %v364_v27  ;;  %v404_v35 = vmul.f32 %v387_v28, %v369_v23 }
  0xdd   : > { %390 = vadd.xlane.f32.xlu1 %v385_v29  ;;  %v402_v34 = vmul.f32 %v385_v29, %v359_v22 }
  0xde   : > { %v401_v31 = vmul.f32 %v384_v30, %v354_v26  ;;  %v403_v33 = vmul.f32 %v386_v32, %v364_v27 }
  0xe0   : > { %388 = vadd.xlane.f32.xlu0 %v384_v30 }
  0xe1   : > { %405 = vadd.xlane.f32.xlu1 %v401_v31  ;;  %v472_v45 = vld [vmem:[%s777_s7 + $0x8] sm:$0xff] (%p735_p4)  ;;  %v476_v47 = vld [vmem:[%s777_s7 + $0x18] sm:$0xff] (%p735_p4) }
  0xe2   : > { %473 = vst [vmem:[%s435_s17 + $0x10] sm:$0xff] (%p735_p4), %v472_v45  ;;  %477 = vst [vmem:[%s435_s17 + $0x30] sm:$0xff] (%p735_p4), %v476_v47 }
  0xe3   : > { %v470_v44 = vld [vmem:[%s777_s7] sm:$0xff] (%p735_p4)  ;;  %v474_v46 = vld [vmem:[%s777_s7 + $0x10] sm:$0xff] (%p735_p4) }
  0xe4   : > { %392 = vadd.xlane.f32.xlu0 %v386_v32  ;;  %471 = vst [vmem:[%s435_s17] sm:$0xff] (%p735_p4), %v470_v44  ;;  %475 = vst [vmem:[%s435_s17 + $0x20] sm:$0xff] (%p735_p4), %v474_v46 }
  0xe5   : > { %409 = vadd.xlane.f32.xlu1 %v403_v33 }
  0xe8   : > { %407 = vadd.xlane.f32.xlu0 %v402_v34 }
  0xec   : > { %411 = vadd.xlane.f32.xlu0 %v404_v35 }
 0x165   : > { %v395_v36 = vpop.xlane.xlu0 %394 }
 0x166   : > { %v391_v37 = vpop.xlane.xlu1 %390  ;;  %400 = vst.msk [vmem:[%s235_s11 + $0x18] sm:$0xff] %vm396_vm3, %v395_v36 }
 0x167   : > { %398 = vst.msk [vmem:[%s235_s11 + $0x8] sm:$0xff] %vm396_vm3, %v391_v37 }
 0x169   : > { %v389_v38 = vpop.xlane.xlu0 %388 }
 0x16a   : > { %v406_v39 = vpop.xlane.xlu1 %405  ;;  %397 = vst.msk [vmem:[%s235_s11] sm:$0xff] %vm396_vm3, %v389_v38 }
 0x16b   : > { %413 = vst.msk [vmem:[%s240_s14] sm:$0xff] %vm396_vm3, %v406_v39 }
 0x16d   : > { %v393_v40 = vpop.xlane.xlu0 %392 }
 0x16e   : > { %v410_v41 = vpop.xlane.xlu1 %409  ;;  %399 = vst.msk [vmem:[%s235_s11 + $0x10] sm:$0xff] %vm396_vm3, %v393_v40 }
 0x16f   : > { %415 = vst.msk [vmem:[%s240_s14 + $0x10] sm:$0xff] %vm396_vm3, %v410_v41 }
 0x171   : > { %v408_v42 = vpop.xlane.xlu0 %407 }
 0x172   : > { %414 = vst.msk [vmem:[%s240_s14 + $0x8] sm:$0xff] %vm396_vm3, %v408_v42  ;;  %433 = sbr.rel (!%p735_p4) target bundleno = 375 (0x177), region = 36 }
 0x175   : > { %v412_v43 = vpop.xlane.xlu0 %411 }
 0x176   : > { %416 = vst.msk [vmem:[%s240_s14 + $0x18] sm:$0xff] %vm396_vm3, %v412_v43 }
 0x177 PF: > { %p13_p8 = scmp.ge.s32.totalorder %s725_s22, 4   ;;  %s825_s18 = smov %s672_s19 }
 0x178   : > { %s826_s19 = smov %s733_s25  ;;  %s827_s20 = smov %s725_s22 }
 0x179   :  { %15 = sbr.rel (!%p13_p8) target bundleno = 2 (0x2), region = 124 }

// kernel: topnet_forward.5
= control target key start
LH: loop header
LB: loop body
LE: loop exit
PB: predicated region body
PF: predicated region fallthrough
CT: control target
= control target key end

     0   :  { %s913_s24 = smov 0   ;;  %s915_s25 = smov 0   ;;  %s1056_s0 = inlined_call_operand.vmem [shape: f32[32,1], index: 0, kind: input, shape index: {}]   ;;  %s1057_s1 = inlined_call_operand.vmem [shape: f32[32,1], index: 1, kind: input, shape index: {}]   ;;  %s1058_s2 = inlined_call_operand.vmem [shape: f32[32,256], index: 2, kind: input, shape index: {}]   ;;  %s1059_s3 = inlined_call_operand.vmem [shape: f32[32,32], index: 3, kind: input, shape index: {}]   ;;  %s1060_s4 = inlined_call_operand.vmem [shape: f32[32,1], index: 4, kind: input, shape index: {}]   ;;  %s1061_s5 = inlined_call_operand.vmem [shape: f32[32,256], index: 5, kind: output, shape index: {0}]   ;;  %s1062_s6 = inlined_call_operand.vmem [shape: f32[2,32,1], index: 6, kind: output, shape index: {1}]   ;;  %s1063_s7 = inlined_call_operand.vmem [shape: f32[2,32,1], index: 7, kind: output, shape index: {2}]  }
   0x1   :  { %s917_s26 = smov 0  }
   0x2 LB: > { %s929_s27 = sadd.s32 4294967295, %s869_s26   ;;  %s932_s28 = sadd.s32 1, %s869_s26   ;;  %s869_s26 = sphi %s917_s26, %s1067_s26   ;;  %s865_s25 = sphi %s915_s25, %s1066_s25   ;;  %s861_s24 = sphi %s913_s24, %s1065_s24  }
   0x3   : > { %s64_s29 = ssub.s32 %s869_s26, %s932_s28  ;;  %s67_s30 = sadd.s32 1, %s865_s25 }
   0x4   : > { %p65_p0 = scmp.eq.s32.totalorder %s64_s29, 0  ;;  %p74_p1 = scmp.ne.s32.totalorder %s865_s25, %s861_s24 }
   0x5   : > { %p75_p2 = scmp.eq.s32.totalorder %s869_s26, 0  ;;  %p146_p3 = scmp.eq.s32.totalorder %s929_s27, 1 }
   0x6   : > { %s942_s8 = scalar_select %p65_p0, %s865_s25, %s67_s30  }
   0x7   : > { %p76_p4 = por %p75_p2, %p74_p1  ;;  %p944_p5 = por %p146_p3, %p74_p1 }
   0x8   : > { %p767_p6 = scmp.ge.s32.totalorder %s869_s26, 2 }
   0xa   : > { %232 = sbr.rel (%p767_p6) target bundleno = 21 (0x15), region = 32 }
   0xf   : > { %235 = sbr.rel (!%p76_p4) target bundleno = 21 (0x15), region = 36  ;;  %s237_s10 = sand.u32 (%p76_p4), 1, %s865_s25  }
  0x10   : > { %s769_s11 = sshll.u32 (%p76_p4), %s869_s26, 3  ;;  %s768_s12 = sshll.u32 (%p76_p4), %s237_s10, 5 }
  0x11   : > { %s241_s15 = scalar_lea.vmem (%p76_p4), %s1058_s2, %s769_s11  ;;  %s239_s16 = scalar_lea.vmem (%p76_p4), [#allocation2], %s768_s12 }
  0x12   : > { %v276_v0 = vld [vmem:[%s241_s15] sm:$0xff] (%p76_p4)  ;;  %v278_v1 = vld [vmem:[%s241_s15 + $0x10] sm:$0xff] (%p76_p4) }
  0x13   : > { %v280_v2 = vld [vmem:[%s241_s15 + $0x20] sm:$0xff] (%p76_p4)  ;;  %277 = vst [vmem:[%s239_s16] sm:$0xff] (%p76_p4), %v276_v0  ;;  %279 = vst [vmem:[%s239_s16 + $0x8] sm:$0xff] (%p76_p4), %v278_v1  ;;  %v282_v3 = vld [vmem:[%s241_s15 + $0x30] sm:$0xff] (%p76_p4) }
  0x14   : > { %281 = vst [vmem:[%s239_s16 + $0x10] sm:$0xff] %v280_v2  ;;  %283 = vst [vmem:[%s239_s16 + $0x18] sm:$0xff] %v282_v3 }
  0x15 PF: > { %p770_p7 = scmp.ge.s32.totalorder %s869_s26, 1  ;;  %p288_p8 = scmp.lt.s32.totalorder %s869_s26, 3 }
  0x17   : > { %p289_p9 = pnand %p770_p7, %p288_p8 }
  0x18   : > { %s295_s11 = sand.u32 (!%p289_p9), 1, %s861_s24   ;;  %s781_s17 = sshll.u32 (!%p289_p9), %s929_s27, 7 }
  0x19   : > { %292 = sbr.rel (%p289_p9) target bundleno = 529 (0x211), region = 74  ;;  %s1001_s12 = sshll.u32 (!%p289_p9), %s295_s11, 5 }
  0x1a   : > { %s297_s13 = scalar_lea.vmem (!%p289_p9), [#allocation2], %s1001_s12  ;;  %s1014_s18 = scalar_lea.vmem (!%p289_p9), [#allocation3], %s1001_s12 }
  0x1b   : > { %p335_p10 = scmp.lt.s32.totalorder (!%p289_p9), %s929_s27, 1 }
  0x1e   : > { %v380_v4 = vld [vmem:[%s1057_s1 + $0x18] sm:$0xff]  ;;  %v871_v6 = vmov 0   ;;  %v351_v7 = vld [vmem:[%s1056_s0 + $0x10] sm:$0xff]  ;;  %v350_v8 = vld [vmem:[%s1056_s0 + $0x8] sm:$0xff]  ;;  %vm445_vm0 = vcmask 261120   ;;  %v547_v49 = vlaneseq  ;;  %v550_v51 = vstv %s781_s17  ;;  %s336_s19 = scalar_select %p335_p10, %s929_s27, 1 }
  0x1f   : > { %v352_v5 = vld [vmem:[%s1056_s0 + $0x18] sm:$0xff]  ;;  %846 = vset.pattern.permute.xlu1 %v871_v6  ;;  %845 = vset.pattern.permute.xlu0 %v871_v6  ;;  %v379_v9 = vld [vmem:[%s1057_s1 + $0x10] sm:$0xff]  ;;  %v349_v10 = vld [vmem:[%s1056_s0] sm:$0xff]  ;;  %v872_v58 = vmov 0.0   ;;  %vm567_vm6 = vcmask 7168   ;;  %s784_s10 = sshll.u32 (%p944_p5), %s929_s27, 3 }
  0x20   : > { %398 = vperm.xlu1 %846, %v380_v4   ;;  %370 = vperm.xlu0 %845, %v352_v5   ;;  %v378_v11 = vld [vmem:[%s1057_s1 + $0x8] sm:$0xff]  ;;  %v377_v12 = vld [vmem:[%s1057_s1] sm:$0xff]  ;;  %v419_v16 = vld [vmem:[%s1059_s3 + $0x10] sm:$0xff]  ;;  %v548_v50 = vand.u32 127, %v547_v49  ;;  %s787_s20 = sshll.u32 %s336_s19, 5 }
  0x21   : > { %v421_v13 = vld [vmem:[%s1060_s4] sm:$0xff]  ;;  %v422_v14 = vld [vmem:[%s1060_s4 + $0x8] sm:$0xff]  ;;  %v423_v17 = vld [vmem:[%s1060_s4 + $0x10] sm:$0xff]  ;;  %808 = vmatprep.mubr.msk.f32.mxu1 %vm445_vm0, %v419_v16  ;;  %s339_s23 = scalar_lea.vmem %s1062_s6, %s787_s20  ;;  %s344_s30 = scalar_lea.vmem %s1063_s7, %s787_s20 }
  0x22   : > { %v417_v15 = vld [vmem:[%s1059_s3] sm:$0xff]  ;;  %v424_v18 = vld [vmem:[%s1060_s4 + $0x18] sm:$0xff]  ;;  %v347_v25 = vld [vmem:[%s297_s13 + $0x10] sm:$0xff]  ;;  %v551_v53 = vadd.s32 %v550_v51, %v548_v50 }
  0x23   : > { %805 = vmatprep.mubr.msk.f32.mxu0 %vm445_vm0, %v417_v15  ;;  %v348_v19 = vld [vmem:[%s297_s13 + $0x18] sm:$0xff]  ;;  %v346_v30 = vld [vmem:[%s297_s13 + $0x8] sm:$0xff]  ;;  %v345_v33 = vld [vmem:[%s297_s13] sm:$0xff]  ;;  %s606_s13 = scalar_lea.vmem (%p944_p5), %s1061_s5, %s784_s10 }
  0x24   : > { %365 = vperm.xlu0 %845, %v351_v7   ;;  %360 = vperm.xlu1 %846, %v350_v8   ;;  %v418_v47 = vld [vmem:[%s1059_s3 + $0x8] sm:$0xff]  ;;  %v420_v48 = vld [vmem:[%s1059_s3 + $0x18] sm:$0xff]  ;;  %vm552_vm5 = vcmp.lt.s32.totalorder %v551_v53, 200 }
  0x25   : > { %v782_v59 = vsel %vm552_vm5, 1.0, %v872_v58 }
  0x28   : > { %393 = vperm.xlu0 %845, %v379_v9   ;;  %355 = vperm.xlu1 %846, %v349_v10  }
  0x2c   : > { %388 = vperm.xlu0 %845, %v378_v11   ;;  %383 = vperm.xlu1 %846, %v377_v12  }
  0x30   : > { %427 = vperm.xlu0 %845, %v421_v13   ;;  %432 = vperm.xlu1 %846, %v422_v14  }
  0x34   : > { %437 = vperm.xlu0 %845, %v423_v17   ;;  %442 = vperm.xlu1 %846, %v424_v18  }
  0x9b   : > { %v399_v20 = vpop.permute.xlu1 %398  ;;  %v371_v21 = vpop.permute.xlu0 %370 }
  0x9c   : > { %v376_v22 = vsub.f32 %v348_v19, %v371_v21 }
  0x9e   : > { %v404_v23 = vmul.f32 %v399_v20, %v376_v22 }
  0x9f   : > { %v366_v24 = vpop.permute.xlu0 %365  ;;  %v361_v26 = vpop.permute.xlu1 %360 }
  0xa0   : > { %v412_v27 = vmul.f32 0.01, %v404_v23  ;;  %vm408_vm1 = vcmp.ge.f32.partialorder %v404_v23, 0.0  ;;  %v375_v28 = vsub.f32 %v347_v25, %v366_v24  ;;  %v374_v35 = vsub.f32 %v346_v30, %v361_v26 }
  0xa2   : > { %v416_v29 = vsel %vm408_vm1, %v404_v23, %v412_v27 }
  0xa3   : > { %v394_v31 = vpop.permute.xlu0 %393  ;;  %v356_v32 = vpop.permute.xlu1 %355  ;;  %797 = vmatprep.subr.mxu0 %v416_v29  ;;  %811 = vmatprep.subr.mxu1 %v416_v29 }
  0xa4   : > { %v403_v34 = vmul.f32 %v394_v31, %v375_v28  ;;  %798 = vmatpush3.msra.mxu0 %v416_v29  ;;  %815 = vmatpush3.msra.mxu1 %v416_v29  ;;  %v373_v37 = vsub.f32 %v345_v33, %v356_v32 }
  0xa6   : > { %vm407_vm2 = vcmp.ge.f32.partialorder %v403_v34, 0.0  ;;  %v411_v36 = vmul.f32 0.01, %v403_v34 }
  0xa7   : > { %v389_v38 = vpop.permute.xlu0 %388  ;;  %v384_v39 = vpop.permute.xlu1 %383 }
  0xa8   : > { %v402_v40 = vmul.f32 %v389_v38, %v374_v35  ;;  %v401_v41 = vmul.f32 %v384_v39, %v373_v37  ;;  %v415_v42 = vsel %vm407_vm2, %v403_v34, %v411_v36 }
  0xa9   : > { %799 = vmatprep.subr.mxu0 %v415_v42  ;;  %812 = vmatprep.subr.mxu1 %v415_v42 }
  0xaa   : > { %vm406_vm3 = vcmp.ge.f32.partialorder %v402_v40, 0.0  ;;  %v410_v43 = vmul.f32 0.01, %v402_v40  ;;  %v409_v44 = vmul.f32 0.01, %v401_v41  ;;  %800 = vmatpush3.msra.mxu0 %v415_v42  ;;  %816 = vmatpush3.msra.mxu1 %v415_v42  ;;  %vm405_vm4 = vcmp.ge.f32.partialorder %v401_v41, 0.0 }
  0xab   : > { %v433_v52 = vpop.permute.xlu1 %432  ;;  %v428_v54 = vpop.permute.xlu0 %427 }
  0xac   : > { %v414_v45 = vsel %vm406_vm3, %v402_v40, %v410_v43  ;;  %v413_v46 = vsel %vm405_vm4, %v401_v41, %v409_v44 }
  0xad   : > { %801 = vmatprep.subr.mxu0 %v414_v45  ;;  %813 = vmatprep.subr.mxu1 %v414_v45 }
  0xae   : > { %802 = vmatpush3.msra.mxu0 %v414_v45  ;;  %817 = vmatpush3.msra.mxu1 %v414_v45 }
  0xaf   : > { %803 = vmatprep.subr.mxu0 %v413_v46  ;;  %814 = vmatprep.subr.mxu1 %v413_v46  ;;  %v443_v55 = vpop.permute.xlu1 %442  ;;  %v438_v60 = vpop.permute.xlu0 %437 }
  0xb0   : > { %804 = vmatpush3.msra.mxu0 %v413_v46  ;;  %818 = vmatpush3.msra.mxu1 %v413_v46 }
  0xb1   : > { %806 = vmatmul.mubr.msk.f32.vlgmr.msra.gmra.mxu0 %vm445_vm0, %v418_v47  ;;  %809 = vmatmul.mubr.msk.f32.vlgmr.msra.gmra.mxu1 %vm445_vm0, %v420_v48 }
 0x171   : > { %v807_v56 = vpop.f32.mrf.mxu0  ;;  %v810_v57 = vpop.f32.mrf.mxu1 }
 0x172   : > { %v530_v61 = vadd.f32 %v807_v56, %v433_v52  ;;  %v540_v62 = vadd.f32 %v810_v57, %v443_v55 }
 0x173   : > { %v524_v63 = vpop.f32.mrf.mxu0  ;;  %v534_v0 = vpop.f32.mrf.mxu1 }
 0x174   : > { %544 = vst [vmem:[%s1014_s18 + $0x8] sm:$0xff] %v530_v61  ;;  %546 = vst [vmem:[%s1014_s18 + $0x18] sm:$0xff] %v540_v62  ;;  %v525_v1 = vadd.f32 %v524_v63, %v428_v54  ;;  %v535_v2 = vadd.f32 %v534_v0, %v438_v60  ;;  %v558_v3 = vmul.f32 %v782_v59, %v540_v62 }
 0x175   : > { %v556_v4 = vmul.f32 %v782_v59, %v530_v61 }
 0x176   : > { %543 = vst [vmem:[%s1014_s18] sm:$0xff] %v525_v1  ;;  %545 = vst [vmem:[%s1014_s18 + $0x10] sm:$0xff] %v535_v2  ;;  %565 = vadd.xlane.f32.xlu0 %v558_v3  ;;  %v555_v5 = vmul.f32 %v782_v59, %v525_v1  ;;  %v557_v7 = vmul.f32 %v782_v59, %v535_v2  ;;  %v575_v10 = vmul.f32 %v558_v3, %v540_v62 }
 0x177   : > { %561 = vadd.xlane.f32.xlu1 %v556_v4  ;;  %v573_v9 = vmul.f32 %v556_v4, %v530_v61 }
 0x178   : > { %v572_v6 = vmul.f32 %v555_v5, %v525_v1  ;;  %v574_v8 = vmul.f32 %v557_v7, %v535_v2 }
 0x17a   : > { %559 = vadd.xlane.f32.xlu0 %v555_v5 }
 0x17b   : > { %576 = vadd.xlane.f32.xlu1 %v572_v6  ;;  %v643_v20 = vld [vmem:[%s1014_s18 + $0x8] sm:$0xff] (%p944_p5)  ;;  %v647_v22 = vld [vmem:[%s1014_s18 + $0x18] sm:$0xff] (%p944_p5) }
 0x17c   : > { %644 = vst [vmem:[%s606_s13 + $0x10] sm:$0xff] (%p944_p5), %v643_v20  ;;  %648 = vst [vmem:[%s606_s13 + $0x30] sm:$0xff] (%p944_p5), %v647_v22 }
 0x17d   : > { %v641_v19 = vld [vmem:[%s1014_s18] sm:$0xff] (%p944_p5)  ;;  %v645_v21 = vld [vmem:[%s1014_s18 + $0x10] sm:$0xff] (%p944_p5) }
 0x17e   : > { %563 = vadd.xlane.f32.xlu0 %v557_v7  ;;  %642 = vst [vmem:[%s606_s13] sm:$0xff] (%p944_p5), %v641_v19  ;;  %646 = vst [vmem:[%s606_s13 + $0x20] sm:$0xff] (%p944_p5), %v645_v21 }
 0x17f   : > { %580 = vadd.xlane.f32.xlu1 %v574_v8 }
 0x182   : > { %578 = vadd.xlane.f32.xlu0 %v573_v9 }
 0x186   : > { %582 = vadd.xlane.f32.xlu0 %v575_v10 }
 0x1ff   : > { %v566_v11 = vpop.xlane.xlu0 %565 }
 0x200   : > { %v562_v12 = vpop.xlane.xlu1 %561  ;;  %571 = vst.msk [vmem:[%s339_s23 + $0x18] sm:$0xff] %vm567_vm6, %v566_v11 }
 0x201   : > { %569 = vst.msk [vmem:[%s339_s23 + $0x8] sm:$0xff] %vm567_vm6, %v562_v12 }
 0x203   : > { %v560_v13 = vpop.xlane.xlu0 %559 }
 0x204   : > { %v577_v14 = vpop.xlane.xlu1 %576  ;;  %568 = vst.msk [vmem:[%s339_s23] sm:$0xff] %vm567_vm6, %v560_v13 }
 0x205   : > { %584 = vst.msk [vmem:[%s344_s30] sm:$0xff] %vm567_vm6, %v577_v14 }
 0x207   : > { %v564_v15 = vpop.xlane.xlu0 %563 }
 0x208   : > { %v581_v16 = vpop.xlane.xlu1 %580  ;;  %570 = vst.msk [vmem:[%s339_s23 + $0x10] sm:$0xff] %vm567_vm6, %v564_v15 }
 0x209   : > { %586 = vst.msk [vmem:[%s344_s30 + $0x10] sm:$0xff] %vm567_vm6, %v581_v16 }
 0x20b   : > { %v579_v17 = vpop.xlane.xlu0 %578 }
 0x20c   : > { %585 = vst.msk [vmem:[%s344_s30 + $0x8] sm:$0xff] %vm567_vm6, %v579_v17  ;;  %604 = sbr.rel (!%p944_p5) target bundleno = 529 (0x211), region = 82 }
 0x20f   : > { %v583_v18 = vpop.xlane.xlu0 %582 }
 0x210   : > { %587 = vst.msk [vmem:[%s344_s30 + $0x18] sm:$0xff] %vm567_vm6, %v583_v18 }
 0x211 PF: > { %p15_p11 = scmp.ge.s32.totalorder %s932_s28, 4   ;;  %s1065_s24 = smov %s865_s25 }
 0x212   : > { %s1066_s25 = smov %s942_s8  ;;  %s1067_s26 = smov %s932_s28 }
 0x213   :  { %17 = sbr.rel (!%p15_p11) target bundleno = 2 (0x2), region = 175 }

</bundles_post_ra>
